<compile_context>
chip_gen: v6e
topology: v6e:2x2x1
jax: 0.10.0
libtpu: 0.0.40
codegen_flags: <defaults>
</compile_context>

<pallas_src>
import functools

import jax
import jax.numpy as jnp
from jax.experimental import pallas as pl
from jax.experimental.pallas import tpu as pltpu

LANES = 128
SUBLANES = 8


def _entropy_kernel(p_ref, o_ref, *, binary: bool, eps: float,
                    rows: int, block_rows: int, needs_mask: bool):
    q = p_ref[...].astype(jnp.float32) * (1.0 - 2.0 * eps) + eps

    if needs_mask:
        # Rows >= `rows` are Pallas block padding (undefined data): replace with a
        # safe probability BEFORE the log, then zero their contribution.
        row0 = pl.program_id(0) * block_rows
        valid = (row0 + jax.lax.broadcasted_iota(jnp.int32, q.shape, 0)) < rows
        q = jnp.where(valid, q, 0.5)

    ent = q * jnp.log(q)
    if binary:
        r = 1.0 - q
        ent = ent + r * jnp.log(r)

    if needs_mask:
        ent = jnp.where(valid, ent, 0.0)

    # (block_rows, 128) -> (8, 128) per-lane partial sums (pure VPU adds;
    # the reshape splits the sublane dim so it is tile-aligned / free).
    o_ref[...] = jnp.sum(ent.reshape(-1, SUBLANES, LANES), axis=0)


def entropy_penalty(p, *, binary: bool = True, eps: float = 1e-4,
                    block_rows: int = 4096):
    """Pallas TPU implementation of EntropyPenalty.forward. Returns an f32 scalar."""
    flat = p.reshape(-1)                         # native dtype, no upcast, no pad
    n = flat.shape[0]

    rows = n // LANES                            # 128-divisible prefix -> kernel
    n_main = rows * LANES
    total = jnp.float32(0.0)

    if rows > 0:
        # block row count: multiple of 32 (covers f32/bf16/int8 sublane packing),
        # clamped so tiny inputs use a single small block.
        br = min(block_rows, ((rows + 31) // 32) * 32)
        grid = pl.cdiv(rows, br)
        needs_mask = (rows % br) != 0

        kernel = functools.partial(
            _entropy_kernel, binary=binary, eps=eps,
            rows=rows, block_rows=br, needs_mask=needs_mask)

        p2 = flat[:n_main].reshape(rows, LANES)  # free bitcast when n % 128 == 0

        partials = pl.pallas_call(
            kernel,
            out_shape=jax.ShapeDtypeStruct((grid * SUBLANES, LANES), jnp.float32),
            grid_spec=pltpu.PrefetchScalarGridSpec(
                num_scalar_prefetch=0,
                grid=(grid,),
                in_specs=[pl.BlockSpec((br, LANES), lambda i: (i, 0))],
                out_specs=pl.BlockSpec((SUBLANES, LANES), lambda i: (i, 0)),
            ),
            compiler_params=pltpu.CompilerParams(
                dimension_semantics=("parallel",)),
        )(p2)
        total = total + jnp.sum(partials)

    if n_main < n:
        # <128-element ragged tail: plain JAX (cheaper than a full padded copy).
        qt = flat[n_main:].astype(jnp.float32) * (1.0 - 2.0 * eps) + eps
        et = qt * jnp.log(qt)
        if binary:
            rt = 1.0 - qt
            et = et + rt * jnp.log(rt)
        total = total + jnp.sum(et)

    return -total


def entropy_penalty_ref(p, *, binary: bool = True, eps: float = 1e-4):
    """Pure-JAX reference mirroring the PyTorch module exactly."""
    p = p.astype(jnp.float32) * (1.0 - 2.0 * eps) + eps
    if binary:
        p = jnp.stack([p, 1.0 - p], axis=-1)
    return -jnp.sum(p * jnp.log(p))


if __name__ == "__main__":
    key = jax.random.PRNGKey(0)
    # probabilities in (0, 1), NCHW-like shape
    x = jax.random.uniform(key, (2, 4, 16, 16), dtype=jnp.float32)

    out = entropy_penalty(x, binary=True, eps=1e-4)
    out = jax.block_until_ready(out)

    ref = entropy_penalty_ref(x, binary=True, eps=1e-4)
    assert jnp.allclose(out, ref, rtol=1e-5, atol=1e-4), (out, ref)

    print("KERNEL_OK")
</pallas_src>

<mosaic_0001>
module attributes {stable_mosaic.version = 11 : i64} {
  func.func @_entropy_kernel(%arg0: i32, %arg1: memref<32x128xf32, #tpu.memory_space<vmem>>, %arg2: memref<8x128xf32, #tpu.memory_space<vmem>>) attributes {dimension_semantics = [#tpu.dimension_semantics<parallel>], iteration_bounds = array<i64: 1>, scalar_prefetch = 0 : i64, scratch_operands = 0 : i64, tpu.core_type = #tpu.core_type<tc>, window_params = [{transform_indices = @transform_0, window_bounds = array<i64: 32, 128>}, {transform_indices = @transform_1, window_bounds = array<i64: 8, 128>}]} {
    %c0 = arith.constant 0 : index
    %c0_0 = arith.constant 0 : index
    %0 = vector.load %arg1[%c0, %c0_0] : memref<32x128xf32, #tpu.memory_space<vmem>>, vector<32x128xf32>
    %cst = arith.constant 9.998000e-01 : f32
    %1 = vector.broadcast %cst : f32 to vector<32x128xf32>
    %2 = arith.mulf %0, %1 : vector<32x128xf32>
    %cst_1 = arith.constant 9.99999974E-5 : f32
    %3 = vector.broadcast %cst_1 : f32 to vector<32x128xf32>
    %4 = arith.addf %2, %3 : vector<32x128xf32>
    %c32_i32 = arith.constant 32 : i32
    %5 = arith.muli %arg0, %c32_i32 : i32
    %6 = tpu.iota {dimensions = array<i32: 0>} : vector<32x128xi32>
    %7 = vector.broadcast %5 : i32 to vector<32x128xi32>
    %8 = arith.addi %7, %6 : vector<32x128xi32>
    %c16_i32 = arith.constant 16 : i32
    %9 = vector.broadcast %c16_i32 : i32 to vector<32x128xi32>
    %10 = arith.cmpi slt, %8, %9 : vector<32x128xi32>
    %cst_2 = arith.constant 5.000000e-01 : f32
    %11 = vector.broadcast %cst_2 : f32 to vector<32x128xf32>
    %12 = arith.select %10, %4, %11 : vector<32x128xi1>, vector<32x128xf32>
    %13 = math.log %12 : vector<32x128xf32>
    %14 = arith.mulf %12, %13 : vector<32x128xf32>
    %cst_3 = arith.constant 1.000000e+00 : f32
    %15 = vector.broadcast %cst_3 : f32 to vector<32x128xf32>
    %16 = arith.subf %15, %12 : vector<32x128xf32>
    %17 = math.log %16 : vector<32x128xf32>
    %18 = arith.mulf %16, %17 : vector<32x128xf32>
    %19 = arith.addf %14, %18 : vector<32x128xf32>
    %cst_4 = arith.constant 0.000000e+00 : f32
    %20 = vector.broadcast %cst_4 : f32 to vector<32x128xf32>
    %21 = arith.select %10, %19, %20 : vector<32x128xi1>, vector<32x128xf32>
    %22 = vector.shape_cast %21 : vector<32x128xf32> to vector<4x8x128xf32>
    %cst_5 = arith.constant dense<0.000000e+00> : vector<8x128xf32>
    %23 = vector.multi_reduction <add>, %22, %cst_5 [0] : vector<4x8x128xf32> to vector<8x128xf32>
    %c0_6 = arith.constant 0 : index
    %c0_7 = arith.constant 0 : index
    %24 = vector.load %arg2[%c0_6, %c0_7] : memref<8x128xf32, #tpu.memory_space<vmem>>, vector<8x128xf32>
    tpu.vector_store %arg2[%c0_6, %c0_7], %23 {strides = array<i32>} : memref<8x128xf32, #tpu.memory_space<vmem>>, vector<8x128xf32>,
    return
  }
  func.func @transform_0(%arg0: i32) -> (i32, i32) {
    %c0_i32 = arith.constant 0 : i32
    %c0_i32_0 = arith.constant 0 : i32
    return %arg0, %c0_i32 : i32, i32
  }
  func.func @transform_1(%arg0: i32) -> (i32, i32) {
    %c0_i32 = arith.constant 0 : i32
    %c0_i32_0 = arith.constant 0 : i32
    return %arg0, %c0_i32 : i32, i32
  }
}

</mosaic_0001>

<bundles_post_ra>
// kernel: tpu_custom_call.1
= control target key start
LH: loop header
LB: loop body
LE: loop exit
PB: predicated region body
PF: predicated region fallthrough
CT: control target
= control target key end

     0   :  { %6 = vsyncpa [#allocation3], 0  ;;  %s185_s0 = inlined_call_operand.hbm [shape: f32[16,128], index: 0, kind: input, shape index: {}]   ;;  %s186_s1 = inlined_call_operand.hbm [shape: f32[8,128], index: 1, kind: output, shape index: {}]  }
   0x1   :  { %7 = vsyncpa [#allocation4], 0 }
   0x2   :  { %12 = vsyncadd [#allocation3], 256  ;;  %s165_s6 = smov [#allocation2]  }
   0x3   :  { %s13_s7 = sshll.u32 %s165_s6, 4  ;;  %s14_s7 = int_to_ptr.vmem [resolvable:$true] %s13_s7 }
   0x4   :  { %s129_s8 = scalar_lea.vmem %s14_s7, 256  ;;  %s133_s9 = scalar_lea.vmem %s14_s7, 512 }
   0x5   :  { %p130_p0 = scmp.ne.s32.totalorder %s14_s7, %s129_s8  ;;  %p134_p1 = scmp.lt.s32.totalorder %s14_s7, %s14_s7 }
   0x6   :  { %p135_p2 = scmp.lt.s32.totalorder %s133_s9, %s129_s8 }
   0x8   :  { %p136_p3 = por %p135_p2, %p134_p1 }
   0xa   :  { %p137_p4 = pnand %p136_p3, %p130_p0 }
   0xc   :  { %140 = shalt.err (!%p137_p4)
}
   0xd   :  { %s166_s10 = smov 128   ;;  %s167_s11 = smov 8  }
   0xe   :  { %19 = dma.hbm_to_vmem [thread:$0]  %s185_s0, 256, %s14_s7, [#allocation3], %s166_s10, %s166_s10, %s167_s11  }
   0xf   :  { %161 = dma.done.wait [#allocation3], 512  }
  0x10   :  { %162 = vsyncadd [#allocation3], 4294966784  ;;  %v23_v0 = vld [vmem:[#allocation2] sm:$0xff]  ;;  %v24_v1 = vld [vmem:[#allocation2 + $0x8] sm:$0xff]  ;;  %s168_s0 = smov [#allocation5]  }
  0x11   :  { %v27_v2 = vmul.f32 0.9998, %v23_v0  ;;  %v28_v3 = vmul.f32 0.9998, %v24_v1  ;;  %s100_s14 = sshll.u32 %s168_s0, 4  ;;  %s101_s14 = int_to_ptr.vmem [resolvable:$true] %s100_s14 }
  0x12   :  { %s141_s15 = scalar_lea.vmem %s101_s14, 128  ;;  %p146_p6 = scmp.lt.s32.totalorder %s101_s14, %s101_s14 }
  0x13   :  { %v31_v4 = vadd.f32 0.0001, %v27_v2  ;;  %v32_v5 = vadd.f32 0.0001, %v28_v3  ;;  %p142_p5 = scmp.ne.s32.totalorder %s101_s14, %s141_s15  ;;  %p147_p7 = scmp.lt.s32.totalorder %s141_s15, %s141_s15 }
  0x15   :  { %113 = vlog2.f32 %v31_v4  ;;  %v66_v6 = vsub.f32 1.0, %v31_v4  ;;  %v67_v7 = vsub.f32 1.0, %v32_v5  ;;  %p148_p8 = por %p147_p7, %p146_p6 }
  0x16   :  { %115 = vlog2.f32 %v32_v5 }
  0x17   :  { %117 = vlog2.f32 %v66_v6  ;;  %p149_p9 = pnand %p148_p8, %p142_p5 }
  0x18   :  { %119 = vlog2.f32 %v67_v7 }
  0x22   :  { %v114_v8 = vpop.eup %113 }
  0x23   :  { %v116_v9 = vpop.eup %115  ;;  %v55_v10 = vmul.f32 0.6931472, %v114_v8 }
  0x24   :  { %v118_v11 = vpop.eup %117  ;;  %v57_v12 = vmul.f32 0.6931472, %v116_v9 }
  0x25   :  { %v120_v13 = vpop.eup %119  ;;  %v62_v14 = vmul.f32 %v55_v10, %v31_v4  ;;  %v71_v15 = vmul.f32 0.6931472, %v118_v11 }
  0x26   :  { %v63_v16 = vmul.f32 %v57_v12, %v32_v5  ;;  %v73_v17 = vmul.f32 0.6931472, %v120_v13 }
  0x27   :  { %v78_v18 = vmul.f32 %v71_v15, %v66_v6 }
  0x28   :  { %v79_v19 = vmul.f32 %v73_v17, %v67_v7 }
  0x29   :  { %v82_v20 = vadd.f32 %v78_v18, %v62_v14 }
  0x2a   :  { %v83_v21 = vadd.f32 %v79_v19, %v63_v16 }
  0x2c   :  { %v90_v22 = vadd.f32 %v83_v21, %v82_v20 }
  0x2e   :  { %93 = vst [vmem:[#allocation5] sm:$0xff] %v90_v22 }
  0x2f   :  { %152 = shalt.err (!%p149_p9)
}
  0x30   :  { %103 = dma.vmem_to_hbm [thread:$0]  %s101_s14, 128, %s186_s1, [#allocation4]  }
  0x31   :  { %163 = dma.done.wait [#allocation4], 128  }
  0x32   :  { %164 = vsyncadd [#allocation4], 4294967168 }
  0x33   :  { %107 = vsyncpa [#allocation3], 1 }
  0x34   :  { %108 = vsyncpa [#allocation4], 1 }

</bundles_post_ra>
